<compile_context>
chip_gen: v5e
topology: v5e:2x2
jax: 0.10.0
libtpu: 0.0.40
codegen_flags: <defaults>
</compile_context>

<pallas_src>
import numpy as np
import jax
import jax.numpy as jnp
from jax.experimental import pallas as pl
from jax.experimental.pallas import tpu as pltpu


def build_grid(resolution):
    """Same construction as the reference (slot-attention) code."""
    ranges = [np.linspace(0.0, 1.0, num=res) for res in resolution]
    grid = np.meshgrid(*ranges, sparse=False, indexing="ij")
    grid = np.stack(grid, axis=-1)
    grid = np.reshape(grid, [resolution[0], resolution[1], -1])
    grid = np.expand_dims(grid, axis=0)
    grid = grid.astype(np.float32)
    return np.concatenate([grid, 1.0 - grid], axis=-1)  # (1, H, W, 4)


def _add_pos_kernel(x_ref, pos_ref, o_ref):
    # x_ref/o_ref/pos_ref: (1, R_block, lanes) blocks.
    o_ref[...] = (x_ref[...] + pos_ref[...]).astype(o_ref.dtype)


def _round_up(v, m):
    return ((v + m - 1) // m) * m


def _choose_row_block(rows, cap_rows, packing):
    """cdiv-based row-block choice: near `cap_rows`, multiple of `packing`,
    and (when possible) an even number of >=2 blocks for the v7x 2-TC split."""
    cap_rows = max(packing, (cap_rows // packing) * packing)
    n_blocks = 1 if rows <= cap_rows else pl.cdiv(rows, cap_rows)
    if rows > packing:
        if n_blocks < 2:
            n_blocks = 2
        elif n_blocks % 2:
            n_blocks += 1
    return _round_up(pl.cdiv(rows, n_blocks), packing)


def soft_positional_embed(x, grid, w, b, *, pixel_mult=1.0,
                          max_block_bytes=4 << 20):
    """
    x:    (B, H, W, C)
    grid: (1, H, W, 4) float32 (from build_grid)
    w:    (4, C) float32 (Linear weight transposed so grid @ w == torch dense)
    b:    (C,)   float32
    returns (B, H, W, C) with out = x + pixel_mult * (grid @ w + b)
    """
    B, H, W, C = x.shape
    S = H * W
    P = S * C
    itemsize = jnp.dtype(x.dtype).itemsize
    packing = 8 * max(1, 4 // itemsize)  # rows per native sublane tile

    # Hoisted positional term (tiny K=4 matmul); pixel_mult folded in once.
    pos = (jnp.dot(grid.reshape(S, 4).astype(jnp.float32),
                   w.astype(jnp.float32),
                   preferred_element_type=jnp.float32)
           + b.reshape(1, C).astype(jnp.float32)) * jnp.float32(pixel_mult)
    # Narrow the broadcast pos stream when activations are a narrower float.
    if jnp.issubdtype(x.dtype, jnp.floating) and itemsize < 4:
        pos = pos.astype(x.dtype)
    pos_itemsize = jnp.dtype(pos.dtype).itemsize

    # Layout: lane-dense (B, R, 128) slab when possible, else (B, S, C).
    # No padding copies in either case; ragged tails are masked by Pallas.
    if P % 128 == 0:
        rows, lanes = P // 128, 128
    else:
        rows, lanes = S, C
    x_slab = x.reshape(B, rows, lanes)
    pos_slab = pos.reshape(1, rows, lanes)

    cap_rows = max(packing, max_block_bytes // (lanes * itemsize))
    r_block = _choose_row_block(rows, cap_rows, packing)
    n_row_blocks = pl.cdiv(rows, r_block)

    cost = pl.CostEstimate(
        flops=B * P,                                     # one add per element
        transcendentals=0,
        bytes_accessed=2 * B * P * itemsize + P * pos_itemsize,
    )

    out = pl.pallas_call(
        _add_pos_kernel,
        out_shape=jax.ShapeDtypeStruct((B, rows, lanes), x.dtype),
        grid_spec=pltpu.PrefetchScalarGridSpec(
            num_scalar_prefetch=0,
            # Batch innermost: the pos block index is constant across
            # consecutive steps, so its DMA is not re-issued per batch element.
            grid=(n_row_blocks, B),
            in_specs=[
                pl.BlockSpec((1, r_block, lanes), lambda ri, bi: (bi, ri, 0)),  # x
                pl.BlockSpec((1, r_block, lanes), lambda ri, bi: (0, ri, 0)),   # pos
            ],
            out_specs=pl.BlockSpec((1, r_block, lanes),
                                   lambda ri, bi: (bi, ri, 0)),
        ),
        compiler_params=pltpu.CompilerParams(
            dimension_semantics=("parallel", "parallel"),
            vmem_limit_bytes=32 * 1024 * 1024),
        cost_estimate=cost,
        input_output_aliases={0: 0},   # reuse x's buffer for the output
    )(x_slab, pos_slab)

    return out.reshape(B, H, W, C)


if __name__ == "__main__":
    # Small deterministic example: batch=2, hidden_dim=32, resolution=(16, 16)
    B, H, W, C = 2, 16, 16, 32
    pixel_mult = 1.0

    key = jax.random.PRNGKey(0)
    kx, kw, kb = jax.random.split(key, 3)

    x = jax.random.normal(kx, (B, H, W, C), dtype=jnp.float32)

    # Deterministic init for nn.Linear(4, hidden_dim): weight (C, 4), bias (C,)
    bound = 1.0 / np.sqrt(4.0)
    w_torch_layout = jax.random.uniform(kw, (C, 4), jnp.float32, -bound, bound)
    bias = jax.random.uniform(kb, (C,), jnp.float32, -bound, bound)
    w = w_torch_layout.T  # (4, C) so that grid @ w == dense(grid) in torch

    grid = jnp.asarray(build_grid((H, W)))  # (1, H, W, 4)

    out = soft_positional_embed(x, grid, w, bias, pixel_mult=pixel_mult)
    out = jax.block_until_ready(out)

    ref = x + pixel_mult * (jnp.einsum("bhwk,kc->bhwc", grid, w) + bias)
    np.testing.assert_allclose(np.asarray(out), np.asarray(ref),
                               rtol=1e-5, atol=1e-5)

    # Second check: non-lane-aligned shape (H*W*C % 128 != 0) exercises the
    # ragged path -- no wrapper-side padding, masked last block inside Pallas.
    B2, H2, W2, C2 = 2, 5, 5, 24
    x2 = jax.random.normal(kx, (B2, H2, W2, C2), dtype=jnp.float32)
    w2 = jax.random.uniform(kw, (C2, 4), jnp.float32, -bound, bound).T
    b2 = jax.random.uniform(kb, (C2,), jnp.float32, -bound, bound)
    grid2 = jnp.asarray(build_grid((H2, W2)))
    out2 = jax.block_until_ready(
        soft_positional_embed(x2, grid2, w2, b2, pixel_mult=0.5))
    ref2 = x2 + 0.5 * (jnp.einsum("bhwk,kc->bhwc", grid2, w2) + b2)
    np.testing.assert_allclose(np.asarray(out2), np.asarray(ref2),
                               rtol=1e-5, atol=1e-5)

    print("KERNEL_OK")
</pallas_src>

<mosaic_0001>
module attributes {stable_mosaic.version = 11 : i64} {
  func.func @_add_pos_kernel(%arg0: i32, %arg1: i32, %arg2: memref<1x32x128xf32, #tpu.memory_space<vmem>>, %arg3: memref<1x32x128xf32, #tpu.memory_space<vmem>>, %arg4: memref<1x32x128xf32, #tpu.memory_space<vmem>>) attributes {dimension_semantics = [#tpu.dimension_semantics<parallel>, #tpu.dimension_semantics<parallel>], iteration_bounds = array<i64: 2, 2>, scalar_prefetch = 0 : i64, scratch_operands = 0 : i64, tpu.core_type = #tpu.core_type<tc>, window_params = [{transform_indices = @transform_0, window_bounds = array<i64: 1, 32, 128>}, {transform_indices = @transform_1, window_bounds = array<i64: 1, 32, 128>}, {transform_indices = @transform_2, window_bounds = array<i64: 1, 32, 128>}]} {
    %c0 = arith.constant 0 : index
    %c0_0 = arith.constant 0 : index
    %c0_1 = arith.constant 0 : index
    %0 = vector.load %arg2[%c0, %c0_0, %c0_1] : memref<1x32x128xf32, #tpu.memory_space<vmem>>, vector<1x32x128xf32>
    %c0_2 = arith.constant 0 : index
    %c0_3 = arith.constant 0 : index
    %c0_4 = arith.constant 0 : index
    %1 = vector.load %arg3[%c0_2, %c0_3, %c0_4] : memref<1x32x128xf32, #tpu.memory_space<vmem>>, vector<1x32x128xf32>
    %2 = arith.addf %0, %1 : vector<1x32x128xf32>
    %c0_5 = arith.constant 0 : index
    %c0_6 = arith.constant 0 : index
    %c0_7 = arith.constant 0 : index
    %3 = vector.load %arg4[%c0_5, %c0_6, %c0_7] : memref<1x32x128xf32, #tpu.memory_space<vmem>>, vector<1x32x128xf32>
    tpu.vector_store %arg4[%c0_5, %c0_6, %c0_7], %2 {strides = array<i32>} : memref<1x32x128xf32, #tpu.memory_space<vmem>>, vector<1x32x128xf32>,
    return
  }
  func.func @transform_0(%arg0: i32, %arg1: i32) -> (i32, i32, i32) {
    %c0_i32 = arith.constant 0 : i32
    %c0_i32_0 = arith.constant 0 : i32
    return %arg1, %arg0, %c0_i32 : i32, i32, i32
  }
  func.func @transform_1(%arg0: i32, %arg1: i32) -> (i32, i32, i32) {
    %c0_i32 = arith.constant 0 : i32
    %c0_i32_0 = arith.constant 0 : i32
    %c0_i32_1 = arith.constant 0 : i32
    return %c0_i32, %arg0, %c0_i32_0 : i32, i32, i32
  }
  func.func @transform_2(%arg0: i32, %arg1: i32) -> (i32, i32, i32) {
    %c0_i32 = arith.constant 0 : i32
    %c0_i32_0 = arith.constant 0 : i32
    return %arg1, %arg0, %c0_i32 : i32, i32, i32
  }
}

</mosaic_0001>

<bundles_post_ra>
// kernel: tpu_custom_call.1
= control target key start
LH: loop header
LB: loop body
LE: loop exit
PB: predicated region body
PF: predicated region fallthrough
CT: control target
= control target key end

     0   :  { %7 = vsyncpa [#allocation3], 0  ;;  %s740_s0 = inlined_call_operand.hbm [shape: f32[2,64,128], index: 0, kind: input, shape index: {}, may-alias: {0,2}]   ;;  %s741_s1 = inlined_call_operand.vmem [shape: f32[1,64,128], index: 1, kind: input, shape index: {}]   ;;  %s742_s2 = inlined_call_operand.hbm [shape: f32[2,64,128], index: 2, kind: output, shape index: {}, may-alias: {0,2}]  }
   0x1   :  { %9 = vsyncpa [#allocation3 + $0x1], 0 }
   0x2   :  { %10 = vsyncpa [#allocation4], 0 }
   0x3   :  { %12 = vsyncpa [#allocation4 + $0x1], 0  ;;  %s592_s9 = smov 0   ;;  %s594_s10 = smov 0  }
   0x4   :  { %s596_s11 = smov 0   ;;  %s598_s12 = smov 0  }
   0x5   :  { %s600_s13 = smov 0   ;;  %s602_s14 = smov 0  }
   0x6   :  { %s604_s15 = smov 0   ;;  %s606_s16 = smov 0  }
   0x7 LB: > { %s342_s17 = sadd.s32 4294967295, %s571_s16   ;;  %s343_s18 = sadd.s32 4294967294, %s571_s16   ;;  %s571_s16 = sphi %s606_s16, %s18_s16   ;;  %s567_s15 = sphi %s604_s15, %s759_s15   ;;  %s563_s14 = sphi %s602_s14, %s758_s14   ;;  %s559_s13 = sphi %s600_s13, %s757_s13   ;;  %s555_s12 = sphi %s598_s12, %s756_s12   ;;  %s551_s11 = sphi %s596_s11, %s755_s11   ;;  %s547_s10 = sphi %s594_s10, %s754_s10   ;;  %s543_s9 = sphi %s592_s9, %s753_s9  }
   0x8   : > { %s27_s19 = sadd.s32 1, %s563_s14  ;;  %s30_s20 = sadd.s32 1, %s567_s15 }
   0x9   : > { %p28_p0 = scmp.ge.s32.totalorder %s27_s19, 2  ;;  %s39_s21 = sadd.s32 1, %s551_s11 }
   0xa   : > { %p46_p1 = scmp.ne.s32.totalorder %s551_s11, %s547_s10  ;;  %p47_p2 = scmp.eq.s32.totalorder %s571_s16, 0 }
   0xb   : > { %s761_s19 = smov (%p28_p0, %s27_s19), 0  ;;  %s763_s20 = smov (!%p28_p0, %s30_s20), %s567_s15 }
   0xc   : > { %745 = sst [smem:[#allocation8_spill]] %s761_s19  ;;  %s34_s22 = ssub.s32 %s563_s14, %s761_s19 }
   0xd   : > { %p645_p3 = por %p47_p2, %p46_p1  ;;  %p32_p4 = scmp.ge.s32.totalorder %s763_s20, 2 }
   0xe   : > { %p52_p5 = scmp.ne.s32.totalorder %s547_s10, %s543_s9  ;;  %p53_p6 = scmp.eq.s32.totalorder %s342_s17, 0 }
   0xf   : > { %p104_p7 = scmp.eq.s32.totalorder %s342_s17, 3  ;;  %s765_s20 = smov (%p32_p4, %s763_s20), 0 }
  0x10   : > { %747 = sst [smem:[#allocation9_spill]] %s765_s20  ;;  %p653_p8 = por %p53_p6, %p52_p5 }
  0x11   : > { %p657_p9 = por %p104_p7, %p46_p1  ;;  %s35_s26 = ssub.s32 %s567_s15, %s765_s20 }
  0x12   : > { %p110_p10 = scmp.eq.s32.totalorder %s343_s18, 3  ;;  %s36_s27 = sor.u32 %s35_s26, %s34_s22 }
  0x13   : > { %p37_p11 = scmp.eq.s32.totalorder %s36_s27, 0  ;;  %p373_p13 = scmp.lt.s32.totalorder %s571_s16, 4 }
  0x14   : > { %p663_p12 = por %p110_p10, %p52_p5  ;;  %s130_s29 = sand.u32 1, %s551_s11  }
  0x15   : > { %s670_s30 = scalar_select %p37_p11, %s551_s11, %s39_s21  }
  0x16   : > { %s346_s3 = sshll.u32 %s130_s29, 5  ;;  %s347_s4 = sshll.u32 %s567_s15, 2 }
  0x17   : > { %s348_s5 = sshll.u32 %s563_s14, 3  ;;  %s134_s6 = scalar_lea.vmem [#allocation2], %s346_s3 }
  0x18   : > { %s144_s7 = sshll.u32 %s134_s6, 4  ;;  %s139_s8 = sadd.s32 %s348_s5, %s347_s4  ;;  %s145_s7 = int_to_ptr.vmem [resolvable:$true] %s144_s7 }
  0x19   : > { %s349_s17 = sshll.u32 %s139_s8, 3  ;;  %p366_p0 = pnand %p373_p13, %p645_p3 }
  0x1a   : > { %s141_s26 = scalar_lea.hbm %s740_s0, %s349_s17  ;;  %s131_s21 = scalar_lea.sflag [#allocation3], %s130_s29 }
  0x1b   : > { %s142_s27 = sshll.u32 %s141_s26, 4  ;;  %s573_s20 = smov 128   ;;  %s143_s27 = int_to_ptr.hbm [resolvable:$true] %s142_s27 }
  0x1c   : > { %s574_s19 = smov 8   ;;  %p350_p1 = scmp.ge.s32.totalorder %s571_s16, 1 }
  0x1d   : > { %368 = dma.hbm_to_vmem [thread:$0]  (!%p366_p0), %s143_s27, 512, %s145_s7, %s131_s21, %s573_s20, %s573_s20, %s574_s19  }
  0x1e   : > { %p161_p2 = scmp.lt.s32.totalorder %s571_s16, 5 }
  0x20   : > { %p162_p4 = pnand %p350_p1, %p161_p2 }
  0x21   : > { %s682_s3 = sand.u32 (!%p162_p4), 1, %s547_s10  }
  0x22   : > { %165 = sbr.rel (%p162_p4) target bundleno = 59 (0x3b), region = 28  ;;  %s351_s23 = sshll.u32 (!%p162_p4), %s682_s3, 5 }
  0x23   : > { %s168_s4 = scalar_lea.sflag (!%p162_p4), [#allocation3], %s682_s3  ;;  %s171_s5 = scalar_lea.vmem (!%p162_p4), [#allocation2], %s351_s23 }
  0x27   : > { %534 = dma.done.wait (%p653_p8), %s168_s4, 512  }
  0x28   : > { %536 = vsyncadd (%p653_p8), %s168_s4, 4294966784  ;;  %s353_s19 = sshll.u32 %s559_s13, 2  ;;  %s357_s20 = sshll.u32 %s555_s12, 3  ;;  %v206_v0 = vld [vmem:[%s171_s5] sm:$0xff]  ;;  %v207_v2 = vld [vmem:[%s171_s5 + $0x8] sm:$0xff] }
  0x29   : > { %p200_p3 = scmp.lt.s32.totalorder %s353_s19, 7  ;;  %s234_s29 = sadd.s32 %s357_s20, %s353_s19  ;;  %v208_v5 = vld [vmem:[%s171_s5 + $0x10] sm:$0xff]  ;;  %v209_v9 = vld [vmem:[%s171_s5 + $0x18] sm:$0xff] }
  0x2a   : > { %s358_s6 = sshll.u32 %s234_s29, 3  ;;  %s197_s21 = scalar_lea.vmem [#allocation5], %s351_s23 }
  0x2b   : > { %s767_s19 = smov (!%p200_p3, %s353_s19), 7  ;;  %s236_s18 = scalar_lea.hbm %s742_s2, %s358_s6 }
  0x2c   : > { %s354_s7 = sshll.u32 %s767_s19, 3  ;;  %s237_s24 = sshll.u32 %s197_s21, 4  ;;  %s698_s24 = int_to_ptr.vmem [resolvable:$true] %s237_s24 }
  0x2d   : > { %s203_s27 = scalar_lea.vmem %s741_s1, %s354_s7  ;;  %s239_s4 = sshll.u32 %s236_s18, 4  ;;  %s240_s4 = int_to_ptr.hbm [resolvable:$true] %s239_s4 }
  0x2e   : > { %v210_v1 = vld [vmem:[%s203_s27] sm:$0xff]  ;;  %v211_v4 = vld [vmem:[%s203_s27 + $0x8] sm:$0xff]  ;;  %v212_v6 = vld [vmem:[%s203_s27 + $0x10] sm:$0xff]  ;;  %s223_s12 = scalar_lea.sflag [#allocation4], %s682_s3  ;;  %s487_s13 = sshra.s32 %s240_s4, 4  ;;  %s488_s13 = int_to_ptr.hbm [resolvable:$true] %s487_s13 }
  0x2f   : > { %v214_v3 = vadd.f32 %v210_v1, %v206_v0  ;;  %v215_v7 = vadd.f32 %v211_v4, %v207_v2  ;;  %v216_v8 = vadd.f32 %v212_v6, %v208_v5  ;;  %v213_v10 = vld [vmem:[%s203_s27 + $0x18] sm:$0xff]  ;;  %s489_s23 = scalar_lea.hbm %s488_s13, 32  ;;  %s493_s29 = scalar_lea.hbm %s742_s2, 128 }
  0x30   : > { %v217_v11 = vadd.f32 %v213_v10, %v209_v9  ;;  %p490_p5 = scmp.ne.s32.totalorder %s488_s13, %s489_s23  ;;  %p494_p8 = scmp.lt.s32.totalorder %s488_s13, %s742_s2 }
  0x31   : > { %218 = vst [vmem:[%s197_s21] sm:$0xff] %v214_v3  ;;  %p495_p10 = scmp.lt.s32.totalorder %s493_s29, %s489_s23 }
  0x32   : > { %219 = vst [vmem:[%s197_s21 + $0x8] sm:$0xff] %v215_v7  ;;  %p491_p6 = pnand %p490_p5, %p657_p9 }
  0x33   : > { %220 = vst [vmem:[%s197_s21 + $0x10] sm:$0xff] %v216_v8  ;;  %p496_p11 = por %p495_p10, %p494_p8 }
  0x34   : > { %221 = vst [vmem:[%s197_s21 + $0x18] sm:$0xff] %v217_v11  ;;  %p492_p7 = pneg %p491_p6 }
  0x36   : > { %p497_p13 = pnand %p496_p11, %p492_p7 }
  0x38   : > { %500 = shalt.err (!%p497_p13)
}
  0x39   : > { %s575_s3 = smov 128   ;;  %s576_s7 = smov 8  }
  0x3a   : > { %363 = dma.vmem_to_hbm [thread:$0]  (%p657_p9), %s698_s24, 512, %s240_s4, %s223_s12, %s575_s3, %s575_s3, %s576_s7  }
  0x3b PF: > { %p374_p0 = scmp.ge.s32.totalorder %s571_s16, 2  ;;  %s254_s8 = sand.u32 1, %s543_s9  }
  0x3c   : > { %s255_s17 = scalar_lea.sflag [#allocation4], %s254_s8 }
  0x3d   : > { %p370_p1 = pnand %p374_p0, %p663_p12 }
  0x3f   : > { %p371_p2 = pneg %p370_p1 }
  0x41   : > { %538 = dma.done.wait (%p371_p2), %s255_s17, 512  }
  0x42   : > { %540 = vsyncadd (%p371_p2), %s255_s17, 4294966784  ;;  %s18_s16 = sadd.s32 1, %s571_s16   ;;  %s751_s25 = sld [smem:[#allocation8_spill]] }
  0x43   : > { %p15_p4 = scmp.ge.s32.totalorder %s18_s16, 6   ;;  %s752_s18 = sld [smem:[#allocation9_spill]] }
  0x44   : > { %s753_s9 = smov %s547_s10  ;;  %s754_s10 = smov %s551_s11 }
  0x45   : > { %s755_s11 = smov %s670_s30  ;;  %s756_s12 = smov %s563_s14 }
  0x46   : > { %s757_s13 = smov %s567_s15  ;;  %17 = sbr.rel (!%p15_p4) target bundleno = 7 (0x7), region = 76 }
  0x48   : > { %s758_s14 = smov %s751_s25 }
  0x49   : > { %s759_s15 = smov %s752_s18 }
  0x4b   :  { %261 = vsyncpa [#allocation3], 1 }
  0x4c   :  { %263 = vsyncpa [#allocation3 + $0x1], 1 }
  0x4d   :  { %264 = vsyncpa [#allocation4], 1 }
  0x4e   :  { %266 = vsyncpa [#allocation4 + $0x1], 1 }

</bundles_post_ra>
